<compile_context>
chip_gen: v7x
topology: tpu7x:2x2x1
jax: 0.10.0
libtpu: 0.0.40
codegen_flags: <defaults>
</compile_context>

<pallas_src>
import functools

import jax
import jax.numpy as jnp
from jax.experimental import pallas as pl
from jax.experimental.pallas import tpu as pltpu


def _round_up(x, m):
    return (x + m - 1) // m * m


def _cdiv(a, b):
    return (a + b - 1) // b


# ----------------------------------------------------------------------------
# Kernel: patch-embedding projection   out = x @ w + b   (tiled over M rows)
# ----------------------------------------------------------------------------
def _patch_embed_kernel(x_ref, w_ref, b_ref, o_ref):
    # x: (TM, K) bf16 row tile.  K is left at its natural size -- a
    #    full-extent last dim is legal under the (8,128) rule and Mosaic pads
    #    the vreg internally, so HBM carries no K padding.
    # w: (K, Np) bf16, resident across the grid.  b: (1, Np) f32.
    # MXU accumulates in f32; bias add stays f32 (v5e VPU has no bf16),
    # final cast matches the requested output dtype.
    acc = jnp.dot(x_ref[...], w_ref[...], preferred_element_type=jnp.float32)
    o_ref[...] = (acc + b_ref[...]).astype(o_ref.dtype)


def patch_embed_matmul(x_patches, w_knp, b_np, *, tm=1024, out_dtype=jnp.float32):
    """x_patches: (M, K) bf16 (or f32) flattened patches -- K is NOT padded.
    w_knp: (K, Np) bf16 with Np a multiple of 128.  b_np: (1, Np) f32.
    Returns (M, Np) `out_dtype`; the caller slices columns if Np > n_out."""
    M, K = x_patches.shape
    Kw, Np = w_knp.shape
    assert Kw == K and Np % 128 == 0

    if x_patches.dtype != jnp.bfloat16:
        x_patches = x_patches.astype(jnp.bfloat16)

    # Balanced row tile: multiple of 16 (bf16 minimum sublane tile is
    # (16,128)), sized so the grid divides M nearly evenly, capped at `tm`.
    # VMEM @ TM=1024, ViTDet-scale K=768 / Np=1024:
    #   x 2x1.5 MiB + w 2x1.5 MiB + b + out 2x4 MiB ~= 14 MiB, inside the
    #   scoped-VMEM defaults (16 MiB v5e, 32 MiB v6e / v7x).  Raise
    #   vmem_limit_bytes via CompilerParams before sweeping tm past 1024
    #   (v6e can take 2048; keep ~1024 on v5e and v7x).
    n_tiles = max(1, _cdiv(M, tm))
    TM = min(_round_up(_cdiv(M, n_tiles), 16), _round_up(M, 16))
    grid = _cdiv(M, TM)

    # NOTE: the resident weight/bias specs could use
    # pipeline_mode=pl.Buffered(1) (constant index_map) to drop their second
    # buffer (~1.5 MiB headroom on v7x); left at the default for portability.
    return pl.pallas_call(
        _patch_embed_kernel,
        out_shape=jax.ShapeDtypeStruct((M, Np), out_dtype),
        grid=(grid,),
        in_specs=[
            pl.BlockSpec((TM, K), lambda i: (i, 0)),   # streamed row tiles
            pl.BlockSpec((K, Np), lambda i: (0, 0)),   # resident weight
            pl.BlockSpec((1, Np), lambda i: (0, 0)),   # resident bias
        ],
        out_specs=pl.BlockSpec((TM, Np), lambda i: (i, 0)),  # lane-dense stores
        compiler_params=pltpu.CompilerParams(
            # independent row tiles -> shard across both TensorCores on v7x
            dimension_semantics=("parallel",)),
    )(x_patches, w_knp, b_np)


# ----------------------------------------------------------------------------
# Nearest-neighbor mask resize, PyTorch F.interpolate(..., mode='nearest')
# semantics: src_index = floor(dst_index * in / out).  Left as a plain JAX
# gather: every dim is far below a vreg lane, so any Pallas formulation is
# >90% padding plus per-step overhead while this gather is essentially free.
# ----------------------------------------------------------------------------
def mask_resize_nearest(mask_bool, size):
    B, H, W = mask_bool.shape
    oh, ow = size
    idx_h = (jnp.arange(oh) * H) // oh
    idx_w = (jnp.arange(ow) * W) // ow
    return mask_bool[:, idx_h][:, :, idx_w]


# ----------------------------------------------------------------------------
# Jitted forward: fuses im2col+cast on the input side and slice+reshape+
# transpose on the output side into single copies around the Pallas kernel.
# ----------------------------------------------------------------------------
@functools.partial(jax.jit, static_argnames=("patch", "num_channels", "size"))
def _backbone_forward(tensors, mask, w_knp, b_np, *, patch, num_channels, size):
    B, C, H, W = tensors.shape
    p = patch
    nh, nw = H // p, W // p

    # im2col: NCHW -> (B*nh*nw, C*p*p), bf16 cast fused into the transpose
    # copy (one HBM pass for the activation before the MXU).
    # TODO(synk): express this im2col through the kernel's BlockSpec/DMA (or
    # switch the model to NHWC) to remove this remaining HBM round trip of
    # the activations on large images.
    xp = tensors.reshape(B, C, nh, p, nw, p)
    xp = jnp.transpose(xp, (0, 2, 4, 1, 3, 5)).astype(jnp.bfloat16)
    xp = xp.reshape(B * nh * nw, C * p * p)

    out = patch_embed_matmul(xp, w_knp, b_np)            # (M, Np) f32

    # Column slice (skipped when num_channels is already 128-aligned),
    # reshape and NCHW transpose fuse into a single copy under jit.
    if out.shape[1] != num_channels:
        out = out[:, :num_channels]
    feat = jnp.transpose(out.reshape(B, nh, nw, num_channels), (0, 3, 1, 2))

    m_resized = mask_resize_nearest(mask, size)
    return {"0": (feat, m_resized)}


# ----------------------------------------------------------------------------
# BackboneBase equivalent
# ----------------------------------------------------------------------------
class BackboneBaseJAX:
    """JAX/Pallas analogue of BackboneBase with a synthetic SwinT-like body."""

    def __init__(self, name, in_chans, img_size, patch, num_channels, key):
        assert name in ("SwinT", "SwinT-S", "ViTDet")
        self.name = name
        self.patch = patch
        self.num_channels = num_channels
        length = img_size // patch
        if name in ("SwinT", "SwinT-S"):
            self.size = (length, length)          # backbone.length
        else:  # ViTDet: mirrors the hard-coded (28, 28) of the PyTorch module
            assert length == 28, "ViTDet mask size is hard-coded to (28, 28)"
            self.size = (28, 28)

        k_w, k_b = jax.random.split(key)
        k_dim = in_chans * patch * patch
        # deterministic synthetic params (Conv2d(in, num_channels, patch, patch))
        self.w = jax.random.normal(k_w, (k_dim, num_channels), jnp.float32) * 0.02
        self.b = jax.random.normal(k_b, (1, num_channels), jnp.float32) * 0.02

        # MXU-ready copies built once at init: pad ONLY the output channels to
        # a multiple of 128 (lane-dense, unmasked stores); K is left unpadded
        # so the activation stream is not inflated.  Weight cast to bf16 once.
        np_ = _round_up(num_channels, 128)
        self.w_pad = jnp.pad(self.w.astype(jnp.bfloat16),
                             ((0, 0), (0, np_ - num_channels)))
        self.b_pad = jnp.pad(self.b, ((0, 0), (0, np_ - num_channels)))

    def __call__(self, tensors, mask):
        # tensors: (B, C, H, W) float32 ; mask: (B, H, W) bool
        assert mask is not None
        return _backbone_forward(tensors, mask, self.w_pad, self.b_pad,
                                 patch=self.patch,
                                 num_channels=self.num_channels,
                                 size=self.size)


# ----------------------------------------------------------------------------
if __name__ == "__main__":
    key = jax.random.PRNGKey(0)
    k_img, k_mask, k_param = jax.random.split(key, 3)

    B, C, H, W = 2, 3, 16, 16
    patch = 2                       # -> backbone.length = 8, size = (8, 8)
    num_channels = 32

    images = jax.random.normal(k_img, (B, C, H, W), jnp.float32)
    mask = jax.random.bernoulli(k_mask, 0.3, (B, H, W))           # bool padding mask

    backbone = BackboneBaseJAX("SwinT", in_chans=C, img_size=H, patch=patch,
                               num_channels=num_channels, key=k_param)

    out = backbone(images, mask)
    feat, out_mask = out["0"]
    jax.block_until_ready(feat)
    jax.block_until_ready(out_mask)

    nh = nw = H // patch
    assert feat.shape == (B, num_channels, nh, nw) and feat.dtype == jnp.float32
    assert out_mask.shape == (B, nh, nw) and out_mask.dtype == jnp.bool_

    # numeric sanity vs. a pure-JAX f32 reference (bf16 matmul -> loose tol)
    xp_ref = images.reshape(B, C, nh, patch, nw, patch)
    xp_ref = jnp.transpose(xp_ref, (0, 2, 4, 1, 3, 5)).reshape(-1, C * patch * patch)
    ref = xp_ref @ backbone.w + backbone.b
    ref = jnp.transpose(ref.reshape(B, nh, nw, num_channels), (0, 3, 1, 2))
    assert bool(jnp.allclose(feat, ref, atol=1e-2, rtol=1e-2))

    # mask resize matches PyTorch F.interpolate(..., 'nearest') semantics
    idx_h = (jnp.arange(nh) * H) // nh
    idx_w = (jnp.arange(nw) * W) // nw
    ref_mask = mask[:, idx_h][:, :, idx_w]
    assert bool(jnp.all(ref_mask == out_mask))

    print("KERNEL_OK")
</pallas_src>

<mosaic_0001>
module attributes {stable_mosaic.version = 11 : i64} {
  func.func @_patch_embed_kernel(%arg0: i32, %arg1: memref<128x12xbf16, #tpu.memory_space<vmem>>, %arg2: memref<12x128xbf16, #tpu.memory_space<vmem>>, %arg3: memref<1x128xf32, #tpu.memory_space<vmem>>, %arg4: memref<128x128xf32, #tpu.memory_space<vmem>>) attributes {dimension_semantics = [#tpu.dimension_semantics<parallel>], iteration_bounds = array<i64: 1>, scalar_prefetch = 0 : i64, scratch_operands = 0 : i64, tpu.core_type = #tpu.core_type<tc>, window_params = [{transform_indices = @transform_0, window_bounds = array<i64: 128, 12>}, {pipeline_mode = #tpu.pipeline_mode<synchronous>, transform_indices = @transform_1, window_bounds = array<i64: 12, 128>}, {pipeline_mode = #tpu.pipeline_mode<synchronous>, transform_indices = @transform_2, window_bounds = array<i64: 1, 128>}, {transform_indices = @transform_3, window_bounds = array<i64: 128, 128>}]} {
    %c0 = arith.constant 0 : index
    %c0_0 = arith.constant 0 : index
    %0 = vector.load %arg1[%c0, %c0_0] : memref<128x12xbf16, #tpu.memory_space<vmem>>, vector<128x12xbf16>
    %c0_1 = arith.constant 0 : index
    %c0_2 = arith.constant 0 : index
    %1 = vector.load %arg2[%c0_1, %c0_2] : memref<12x128xbf16, #tpu.memory_space<vmem>>, vector<12x128xbf16>
    %cst = arith.constant dense<0.000000e+00> : vector<128x128xf32>
    %2 = tpu.matmul %0, %1, %cst {dimension_numbers = #tpu.dot_dimension_numbers<[1], [0], [0], [1], [0, 0, 1, 1], [], []>} : vector<128x12xbf16>, vector<12x128xbf16>, vector<128x128xf32> -> vector<128x128xf32>
    %c0_3 = arith.constant 0 : index
    %c0_4 = arith.constant 0 : index
    %3 = vector.load %arg3[%c0_3, %c0_4] : memref<1x128xf32, #tpu.memory_space<vmem>>, vector<1x128xf32>
    %4 = vector.broadcast %3 : vector<1x128xf32> to vector<128x128xf32>
    %5 = arith.addf %2, %4 : vector<128x128xf32>
    %c0_5 = arith.constant 0 : index
    %c0_6 = arith.constant 0 : index
    %6 = vector.load %arg4[%c0_5, %c0_6] : memref<128x128xf32, #tpu.memory_space<vmem>>, vector<128x128xf32>
    tpu.vector_store %arg4[%c0_5, %c0_6], %5 {strides = array<i32>} : memref<128x128xf32, #tpu.memory_space<vmem>>, vector<128x128xf32>,
    return
  }
  func.func @transform_0(%arg0: i32) -> (i32, i32) {
    %c0_i32 = arith.constant 0 : i32
    %c0_i32_0 = arith.constant 0 : i32
    return %arg0, %c0_i32 : i32, i32
  }
  func.func @transform_1(%arg0: i32) -> (i32, i32) {
    %c0_i32 = arith.constant 0 : i32
    %c0_i32_0 = arith.constant 0 : i32
    %c0_i32_1 = arith.constant 0 : i32
    return %c0_i32, %c0_i32_0 : i32, i32
  }
  func.func @transform_2(%arg0: i32) -> (i32, i32) {
    %c0_i32 = arith.constant 0 : i32
    %c0_i32_0 = arith.constant 0 : i32
    %c0_i32_1 = arith.constant 0 : i32
    return %c0_i32, %c0_i32_0 : i32, i32
  }
  func.func @transform_3(%arg0: i32) -> (i32, i32) {
    %c0_i32 = arith.constant 0 : i32
    %c0_i32_0 = arith.constant 0 : i32
    return %arg0, %c0_i32 : i32, i32
  }
}

</mosaic_0001>

<bundles_post_ra>
// kernel: _backbone_forward.1
= control target key start
LH: loop header
LB: loop body
LE: loop exit
PB: predicated region body
PF: predicated region fallthrough
CT: control target
= control target key end

     0   :  { %vm111_vm0 = vcmask 1045504   ;;  %vm86_vm1 = vcmask 97280   ;;  %s402_s0 = inlined_call_operand.vmem [shape: bf16[128,12], index: 0, kind: input, shape index: {}]   ;;  %s403_s1 = inlined_call_operand.vmem [shape: bf16[12,128], index: 1, kind: input, shape index: {}]   ;;  %s404_s2 = inlined_call_operand.vmem [shape: f32[1,128], index: 2, kind: input, shape index: {}]   ;;  %s405_s3 = inlined_call_operand.hbm [shape: f32[128,128], index: 3, kind: output, shape index: {}]  }
   0x1   :  { %v296_v0 = vld [vmem:[%s403_s1] sm:$0x3f]   ;;  %v299_v4 = vld [vmem:[%s402_s0 + $0x8] sm:$0xff]   ;;  %v301_v6 = vld [vmem:[%s402_s0 + $0x10] sm:$0xff]  }
   0x2   :  { %v297_v1 = vld [vmem:[%s402_s0] sm:$0xff]   ;;  %291 = vmatprep.subr.msk.bf16.mxu0 %vm111_vm0, %v296_v0  ;;  %292 = vmatprep.subr.msk.bf16.mxu1 %vm111_vm0, %v296_v0  ;;  %v113_v2 = vsel %vm111_vm0, %v296_v0, 0  ;;  %v300_v5 = vld [vmem:[%s402_s0 + $0x28] sm:$0xff]   ;;  %v302_v7 = vld [vmem:[%s402_s0 + $0x30] sm:$0xff]  }
   0x3   :  { %272 = vmatpush3.bf16.msra.mxu0 %v113_v2  ;;  %290 = vmatpush3.bf16.msra.mxu1 %v113_v2  ;;  %v298_v3 = vld [vmem:[%s402_s0 + $0x20] sm:$0xff]  }
   0x4   :  { %273 = vmatprep.mubr.msk.bf16.mxu0 %vm86_vm1, %v297_v1  ;;  %281 = vmatprep.mubr.msk.bf16.mxu1 %vm86_vm1, %v298_v3 }
   0x6   :  { %274 = vmatmul.mubr.msk.bf16.vlgmr.msra.gmra.mrb[0].mxu0 %vm86_vm1, %v299_v4  ;;  %282 = vmatmul.mubr.msk.bf16.vlgmr.msra.gmra.mrb[0].mxu1 %vm86_vm1, %v300_v5 }
   0x7   :  { %277 = vmatprep.mubr.msk.bf16.mxu0 %vm86_vm1, %v301_v6  ;;  %285 = vmatprep.mubr.msk.bf16.mxu1 %vm86_vm1, %v302_v7 }
   0x8   :  { %8 = vsyncpa [#allocation3], 0  ;;  %v303_v8 = vld [vmem:[%s402_s0 + $0x18] sm:$0xff]   ;;  %v244_v10 = vld [vmem:[%s404_s2] ss:$0 sm:$0xff] }
   0x9   :  { %v304_v9 = vld [vmem:[%s402_s0 + $0x38] sm:$0xff]   ;;  %s329_s0 = smov [#allocation2]  }
   0xa   :  { %s233_s2 = sshll.u32 %s329_s0, 4  ;;  %s234_s2 = int_to_ptr.vmem [resolvable:$true] %s233_s2 }
   0xb   :  { %s305_s4 = scalar_lea.vmem %s234_s2, 2048  ;;  %p310_p1 = scmp.lt.s32.totalorder %s234_s2, %s234_s2 }
   0xc   :  { %p306_p0 = scmp.ne.s32.totalorder %s234_s2, %s305_s4  ;;  %p311_p2 = scmp.lt.s32.totalorder %s305_s4, %s305_s4 }
   0xe   :  { %278 = vmatmul.mubr.msk.bf16.gmra.mrb[4].mxu0 %vm86_vm1, %v303_v8  ;;  %286 = vmatmul.mubr.msk.bf16.gmra.mrb[4].mxu1 %vm86_vm1, %v304_v9  ;;  %p312_p3 = por %p311_p2, %p310_p1 }
  0x10   :  { %p313_p4 = pnand %p312_p3, %p306_p0 }
  0xd9   :  { %v275_v11 = vpop.f32.mrb[0].mxu0  ;;  %v283_v13 = vpop.f32.mrb[0].mxu1 }
  0xda   :  { %v158_v12 = vadd.f32 %v275_v11, %v244_v10  ;;  %v149_v14 = vpop.f32.mrb[1].mxu0  ;;  %v190_v15 = vadd.f32 %v283_v13, %v244_v10  ;;  %v181_v17 = vpop.f32.mrb[1].mxu1 }
  0xdb   :  { %v150_v16 = vadd.f32 %v244_v10, %v149_v14  ;;  %v276_v18 = vpop.f32.mrb[2].mxu0  ;;  %v182_v19 = vadd.f32 %v244_v10, %v181_v17  ;;  %v284_v21 = vpop.f32.mrb[2].mxu1 }
  0xdc   :  { %214 = vst [vmem:[#allocation2 + $0x10] sm:$0xff] %v158_v12  ;;  %v161_v20 = vadd.f32 %v276_v18, %v244_v10  ;;  %v152_v22 = vpop.f32.mrb[3].mxu0  ;;  %222 = vst [vmem:[#allocation2 + $0x50] sm:$0xff] %v190_v15  ;;  %v193_v23 = vadd.f32 %v284_v21, %v244_v10  ;;  %v184_v25 = vpop.f32.mrb[3].mxu1 }
  0xdd   :  { %212 = vst [vmem:[#allocation2] sm:$0xff] %v150_v16  ;;  %v153_v24 = vadd.f32 %v244_v10, %v152_v22  ;;  %220 = vst [vmem:[#allocation2 + $0x40] sm:$0xff] %v182_v19  ;;  %v185_v26 = vadd.f32 %v244_v10, %v184_v25 }
  0xde   :  { %215 = vst [vmem:[#allocation2 + $0x18] sm:$0xff] %v161_v20  ;;  %223 = vst [vmem:[#allocation2 + $0x58] sm:$0xff] %v193_v23 }
  0xdf   :  { %213 = vst [vmem:[#allocation2 + $0x8] sm:$0xff] %v153_v24  ;;  %221 = vst [vmem:[#allocation2 + $0x48] sm:$0xff] %v185_v26 }
  0xe1   :  { %v279_v27 = vpop.f32.mrb[4].mxu0  ;;  %v287_v29 = vpop.f32.mrb[4].mxu1 }
  0xe2   :  { %v174_v28 = vadd.f32 %v279_v27, %v244_v10  ;;  %v165_v30 = vpop.f32.mrb[5].mxu0  ;;  %v206_v31 = vadd.f32 %v287_v29, %v244_v10  ;;  %v197_v33 = vpop.f32.mrb[5].mxu1 }
  0xe3   :  { %v166_v32 = vadd.f32 %v244_v10, %v165_v30  ;;  %v280_v34 = vpop.f32.mrb[6].mxu0  ;;  %v198_v35 = vadd.f32 %v244_v10, %v197_v33  ;;  %v288_v37 = vpop.f32.mrb[6].mxu1 }
  0xe4   :  { %218 = vst [vmem:[#allocation2 + $0x30] sm:$0xff] %v174_v28  ;;  %v177_v36 = vadd.f32 %v280_v34, %v244_v10  ;;  %v168_v38 = vpop.f32.mrb[7].mxu0  ;;  %226 = vst [vmem:[#allocation2 + $0x70] sm:$0xff] %v206_v31  ;;  %v209_v39 = vadd.f32 %v288_v37, %v244_v10  ;;  %v200_v41 = vpop.f32.mrb[7].mxu1 }
  0xe5   :  { %216 = vst [vmem:[#allocation2 + $0x20] sm:$0xff] %v166_v32  ;;  %v169_v40 = vadd.f32 %v244_v10, %v168_v38  ;;  %224 = vst [vmem:[#allocation2 + $0x60] sm:$0xff] %v198_v35  ;;  %v201_v42 = vadd.f32 %v244_v10, %v200_v41 }
  0xe6   :  { %219 = vst [vmem:[#allocation2 + $0x38] sm:$0xff] %v177_v36  ;;  %227 = vst [vmem:[#allocation2 + $0x78] sm:$0xff] %v209_v39 }
  0xe7   :  { %217 = vst [vmem:[#allocation2 + $0x28] sm:$0xff] %v169_v40  ;;  %225 = vst [vmem:[#allocation2 + $0x68] sm:$0xff] %v201_v42 }
  0xe8   :  { %316 = shalt.err (!%p313_p4)
}
  0xe9   :  { %s317_s7 = scalar_lea.hbm %s405_s3, 2048 }
  0xea   :  { %p318_p5 = scmp.ne.s32.totalorder %s405_s3, %s317_s7  ;;  %p321_p6 = scmp.lt.u32.totalorder %s317_s7, %s405_s3 }
  0xec   :  { %p323_p7 = pnand %p321_p6, %p318_p5 }
  0xee   :  { %326 = shalt.err (!%p323_p7)
}
  0xef   :  { %s330_s12 = smov 128   ;;  %s331_s13 = smov 8  }
  0xf0   :  { %239 = dma.vmem_to_hbm [thread:$0]  %s234_s2, 2048, %s405_s3, [#allocation3], %s330_s12, %s330_s12, %s331_s13  }
  0xf1   :  { %327 = dma.done.wait [#allocation3], 2048  }
  0xf2   :  { %328 = vsyncadd [#allocation3], 4294965248 }
  0xf3   :  { %243 = vsyncpa [#allocation3], 1 }

</bundles_post_ra>
